<compile_context>
chip_gen: v7x
topology: tpu7x:2x2x1
jax: 0.10.0
libtpu: 0.0.40
codegen_flags: <defaults>
</compile_context>

<pallas_src>
import functools

import jax
import jax.numpy as jnp
from jax.experimental import pallas as pl
from jax.experimental.pallas import tpu as pltpu

LANE = 128          # vreg lane width: padded hidden / output width
MAX_TILE_B = 8192   # largest batch tile (~11.3 MB of double-buffered f32 blocks)
MIN_TILE_B = 128    # don't split batches below 2*MIN_TILE_B (step overhead dominates)
NEG_PAD = -1e30     # pad-lane bias -> sigmoid() == 0.0 exactly in the pad columns


def _round8(n: int) -> int:
    return -(-int(n) // 8) * 8


def _sigmoid(y, approx: bool):
    e = jnp.exp(-y)                       # EUP
    if approx:
        return pl.reciprocal(1.0 + e, approx=True)   # EUP slot, frees the VALU
    return 1.0 / (1.0 + e)


def _qnet_kernel(x_ref, p_ref, o_ref, *, approx_sigmoid: bool):
    """Fused 2-layer MLP on one (TB, F_in) batch tile.

    p_ref layout (rows, 128), all segment offsets 8-aligned:
      [0            : F_in       ]  W1^T  (F_in, 128)   (hidden padded to 128)
      [r8(F_in)     : r8(F_in)+8 ]  b1    (row 0 valid; pad lanes 0)
      [r8(F_in)+8   : +8+128     ]  W2^T  (128, 128)    (output padded to 128)
      [r8(F_in)+136 : +136+8     ]  b2    (row 0 valid; pad lanes NEG_PAD)
    """
    f_in = x_ref.shape[1]
    r_b1 = _round8(f_in)
    r_w2 = r_b1 + 8
    r_b2 = r_w2 + LANE

    w1 = p_ref[0:f_in, :]                     # (F_in, 128)
    b1 = p_ref[r_b1:r_b1 + 1, :]              # (1, 128)
    w2 = p_ref[r_w2:r_w2 + LANE, :]           # (128, 128)
    b2 = p_ref[r_b2:r_b2 + 1, :]              # (1, 128)

    # In-kernel cast (cheap VALU op hidden under MXU/EUP work) — the wrapper
    # never materialises a cast copy of x in HBM.
    x = x_ref[...].astype(w1.dtype)           # (TB, F_in)

    h = jnp.dot(x, w1, preferred_element_type=jnp.float32) + b1
    h = _sigmoid(h, approx_sigmoid)           # hidden pad lanes -> 0.5, killed by zero W2 rows
    y = jnp.dot(h.astype(w2.dtype), w2, preferred_element_type=jnp.float32) + b2
    o_ref[...] = _sigmoid(y, approx_sigmoid).astype(o_ref.dtype)  # pad lanes -> exactly 0


def prepare_params(w1, b1, w2, b2, dtype=jnp.float32):
    """One-time param prep: transpose, zero-pad to lane width, pack into one slab.

    w1: (64, F_in), b1: (64,), w2: (5, 64), b2: (5,)  -- PyTorch nn.Linear layout.
    Use dtype=jnp.bfloat16 for large-batch / bandwidth-bound serving (v6e/v7x).
    """
    w1 = jnp.asarray(w1, jnp.float32)
    b1 = jnp.asarray(b1, jnp.float32)
    w2 = jnp.asarray(w2, jnp.float32)
    b2 = jnp.asarray(b2, jnp.float32)
    hidden, f_in = w1.shape
    out_dim = w2.shape[0]
    assert hidden <= LANE and out_dim <= LANE

    w1t = jnp.zeros((_round8(f_in), LANE), jnp.float32).at[:f_in, :hidden].set(w1.T)
    b1r = jnp.zeros((8, LANE), jnp.float32).at[0, :hidden].set(b1)
    w2t = jnp.zeros((LANE, LANE), jnp.float32).at[:hidden, :out_dim].set(w2.T)
    b2_row = jnp.full((LANE,), NEG_PAD, jnp.float32).at[:out_dim].set(b2)
    b2r = jnp.zeros((8, LANE), jnp.float32).at[0].set(b2_row)
    slab = jnp.concatenate([w1t, b1r, w2t, b2r], axis=0).astype(dtype)
    return slab, (int(f_in), int(hidden), int(out_dim))


def _choose_tiling(B: int):
    """Pick (tb, bp, n_tiles): minimal padding, tb multiple of 8, even block
    count (>=2) for mid/large batches so v7x's two TensorCores both get work."""
    if B < 2 * MIN_TILE_B:
        tb = _round8(B)
        return tb, tb, 1
    n_tiles = pl.cdiv(B, MAX_TILE_B)
    if n_tiles % 2:
        n_tiles += 1
    tb = _round8(pl.cdiv(B, n_tiles))
    return tb, tb * n_tiles, n_tiles


def linear_qnet_forward(x, params, *, out_dtype=jnp.float32,
                        approx_sigmoid=False, slice_output=True):
    """Forward pass of Linear_QNet.

    x      : (B, 6*input_size) or (6*input_size,) float (any float dtype; cast in-kernel)
    params : output of prepare_params(...)
    slice_output=True  -> (B, 5) / (5,)   (PyTorch semantics)
    slice_output=False -> padded (bp, 128) buffer straight from the kernel
                          (cols >= 5 are exactly 0.0, rows >= B are padding);
                          use this to feed the next jit'd op / argmax without
                          an extra HBM slice pass.
    """
    slab, (f_in, _hidden, out_dim) = params

    squeeze = x.ndim == 1
    if squeeze:
        x = x[None, :]
    x = jnp.asarray(x)
    if not jnp.issubdtype(x.dtype, jnp.floating):
        x = x.astype(jnp.float32)
    B = x.shape[0]
    assert x.shape[1] == f_in

    tb, bp, n_tiles = _choose_tiling(B)
    if bp != B:                       # only the <8-row round-up remainder; usually skipped
        x = jnp.pad(x, ((0, bp - B), (0, 0)))

    kernel = functools.partial(_qnet_kernel, approx_sigmoid=approx_sigmoid)
    out = pl.pallas_call(
        kernel,
        out_shape=jax.ShapeDtypeStruct((bp, LANE), out_dtype),
        grid_spec=pltpu.PrefetchScalarGridSpec(
            num_scalar_prefetch=0,
            grid=(n_tiles,),
            in_specs=[
                pl.BlockSpec((tb, f_in), lambda i: (i, 0)),       # x tile, pipelined
                pl.BlockSpec(slab.shape, lambda i: (0, 0)),       # params, VMEM-resident
            ],
            out_specs=pl.BlockSpec((tb, LANE), lambda i: (i, 0)),  # lane-dense output
        ),
        compiler_params=pltpu.CompilerParams(
            dimension_semantics=("parallel",),          # shard batch blocks over v7x's 2 TCs
            vmem_limit_bytes=32 * 1024 * 1024),         # explicit: v5e default is only 16 MiB
    )(x, slab)

    if not slice_output:
        return out
    out = out[:B, :out_dim]
    return out[0] if squeeze else out


def init_params(input_size, key):
    """Deterministic init matching nn.Linear shapes (uniform +-1/sqrt(fan_in))."""
    f_in = 6 * int(input_size)
    k1, k2, k3, k4 = jax.random.split(key, 4)
    bound1 = 1.0 / jnp.sqrt(f_in)
    bound2 = 1.0 / jnp.sqrt(64.0)
    w1 = jax.random.uniform(k1, (64, f_in), jnp.float32, -bound1, bound1)
    b1 = jax.random.uniform(k2, (64,), jnp.float32, -bound1, bound1)
    w2 = jax.random.uniform(k3, (5, 64), jnp.float32, -bound2, bound2)
    b2 = jax.random.uniform(k4, (5,), jnp.float32, -bound2, bound2)
    return w1, b1, w2, b2


# TODO(synk): Linear_QNet.save() (file I/O) and fill() (host-side Scene simulation
# loop) have no Pallas equivalent; only forward() is implemented here.


if __name__ == "__main__":
    input_size = 8                      # -> in_features = 48
    batch = 2
    key = jax.random.PRNGKey(0)
    kx, kp = jax.random.split(key)

    w1, b1, w2, b2 = init_params(input_size, kp)
    params_f32 = prepare_params(w1, b1, w2, b2)                   # exact path
    params_bf16 = prepare_params(w1, b1, w2, b2, dtype=jnp.bfloat16)  # serving path

    def ref_fn(xx):
        return jax.nn.sigmoid(jax.nn.sigmoid(xx @ w1.T + b1) @ w2.T + b2)

    # 1) small batch (RL inference style) — launch-overhead dominated by design.
    x = jax.random.normal(kx, (batch, 6 * input_size), jnp.float32)
    out = jax.block_until_ready(linear_qnet_forward(x, params_f32))
    assert out.shape == (batch, 5)
    assert jnp.allclose(out, ref_fn(x), atol=1e-5, rtol=1e-5)

    # 2) 1-D input (as used by fill(): self(x.flatten()))
    x1 = jax.random.normal(kx, (6 * input_size,), jnp.float32)
    out1 = jax.block_until_ready(linear_qnet_forward(x1, params_f32))
    assert out1.shape == (5,)
    assert jnp.allclose(out1, ref_fn(x1[None, :])[0], atol=1e-5, rtol=1e-5)

    # 3) mid batch: 2 balanced blocks of 320 rows, zero padding; also check the
    #    un-sliced padded buffer (pad lanes are exactly 0 -> safe for argmax).
    xb = jax.random.normal(kx, (640, 6 * input_size), jnp.float32)
    outb = jax.block_until_ready(linear_qnet_forward(xb, params_f32))
    assert outb.shape == (640, 5)
    assert jnp.allclose(outb, ref_fn(xb), atol=1e-5, rtol=1e-5)
    out_pad = jax.block_until_ready(
        linear_qnet_forward(xb, params_f32, slice_output=False))
    assert out_pad.shape == (640, LANE)
    assert jnp.allclose(out_pad[:, :5], ref_fn(xb), atol=1e-5, rtol=1e-5)
    assert bool(jnp.all(out_pad[:, 5:] == 0.0))

    # 4) large-batch serving path: bf16 slab + bf16 output + approx sigmoid
    #    (x stays f32 in HBM; cast happens inside the kernel).
    xl = jax.random.normal(kx, (2048, 6 * input_size), jnp.float32)
    outl = jax.block_until_ready(
        linear_qnet_forward(xl, params_bf16, out_dtype=jnp.bfloat16,
                            approx_sigmoid=True))
    assert outl.shape == (2048, 5) and outl.dtype == jnp.bfloat16
    assert jnp.allclose(outl.astype(jnp.float32), ref_fn(xl), atol=3e-2)

    print("KERNEL_OK")
</pallas_src>

<mosaic_0001>
module attributes {stable_mosaic.version = 11 : i64} {
  func.func @_qnet_kernel(%arg0: i32, %arg1: memref<8x48xf32, #tpu.memory_space<vmem>>, %arg2: memref<192x128xf32, #tpu.memory_space<vmem>>, %arg3: memref<8x128xf32, #tpu.memory_space<vmem>>) attributes {dimension_semantics = [#tpu.dimension_semantics<parallel>], iteration_bounds = array<i64: 1>, scalar_prefetch = 0 : i64, scratch_operands = 0 : i64, tpu.core_type = #tpu.core_type<tc>, window_params = [{transform_indices = @transform_0, window_bounds = array<i64: 8, 48>}, {pipeline_mode = #tpu.pipeline_mode<synchronous>, transform_indices = @transform_1, window_bounds = array<i64: 192, 128>}, {transform_indices = @transform_2, window_bounds = array<i64: 8, 128>}]} {
    %c0 = arith.constant 0 : index
    %c0_0 = arith.constant 0 : index
    %0 = vector.load %arg2[%c0, %c0_0] : memref<192x128xf32, #tpu.memory_space<vmem>>, vector<48x128xf32>
    %c48 = arith.constant 48 : index
    %c0_1 = arith.constant 0 : index
    %1 = vector.load %arg2[%c48, %c0_1] : memref<192x128xf32, #tpu.memory_space<vmem>>, vector<1x128xf32>
    %c56 = arith.constant 56 : index
    %c0_2 = arith.constant 0 : index
    %2 = vector.load %arg2[%c56, %c0_2] : memref<192x128xf32, #tpu.memory_space<vmem>>, vector<128x128xf32>
    %c184 = arith.constant 184 : index
    %c0_3 = arith.constant 0 : index
    %3 = vector.load %arg2[%c184, %c0_3] : memref<192x128xf32, #tpu.memory_space<vmem>>, vector<1x128xf32>
    %c0_4 = arith.constant 0 : index
    %c0_5 = arith.constant 0 : index
    %4 = vector.load %arg1[%c0_4, %c0_5] : memref<8x48xf32, #tpu.memory_space<vmem>>, vector<8x48xf32>
    %cst = arith.constant dense<0.000000e+00> : vector<8x128xf32>
    %5 = tpu.matmul %4, %0, %cst {dimension_numbers = #tpu.dot_dimension_numbers<[1], [0], [0], [1], [0, 0, 1, 1], [], []>} : vector<8x48xf32>, vector<48x128xf32>, vector<8x128xf32> -> vector<8x128xf32>
    %6 = vector.broadcast %1 : vector<1x128xf32> to vector<8x128xf32>
    %7 = arith.addf %5, %6 : vector<8x128xf32>
    %cst_6 = arith.constant 0.000000e+00 : f32
    %8 = vector.broadcast %cst_6 : f32 to vector<8x128xf32>
    %9 = arith.subf %8, %7 : vector<8x128xf32>
    %10 = math.exp %9 : vector<8x128xf32>
    %cst_7 = arith.constant 1.000000e+00 : f32
    %11 = vector.broadcast %cst_7 : f32 to vector<8x128xf32>
    %12 = arith.addf %11, %10 : vector<8x128xf32>
    %cst_8 = arith.constant 1.000000e+00 : f32
    %13 = vector.broadcast %cst_8 : f32 to vector<8x128xf32>
    %14 = arith.divf %13, %12 : vector<8x128xf32>
    %cst_9 = arith.constant dense<0.000000e+00> : vector<8x128xf32>
    %15 = tpu.matmul %14, %2, %cst_9 {dimension_numbers = #tpu.dot_dimension_numbers<[1], [0], [0], [1], [0, 0, 1, 1], [], []>} : vector<8x128xf32>, vector<128x128xf32>, vector<8x128xf32> -> vector<8x128xf32>
    %16 = vector.broadcast %3 : vector<1x128xf32> to vector<8x128xf32>
    %17 = arith.addf %15, %16 : vector<8x128xf32>
    %cst_10 = arith.constant 0.000000e+00 : f32
    %18 = vector.broadcast %cst_10 : f32 to vector<8x128xf32>
    %19 = arith.subf %18, %17 : vector<8x128xf32>
    %20 = math.exp %19 : vector<8x128xf32>
    %cst_11 = arith.constant 1.000000e+00 : f32
    %21 = vector.broadcast %cst_11 : f32 to vector<8x128xf32>
    %22 = arith.addf %21, %20 : vector<8x128xf32>
    %cst_12 = arith.constant 1.000000e+00 : f32
    %23 = vector.broadcast %cst_12 : f32 to vector<8x128xf32>
    %24 = arith.divf %23, %22 : vector<8x128xf32>
    %c0_13 = arith.constant 0 : index
    %c0_14 = arith.constant 0 : index
    %25 = vector.load %arg3[%c0_13, %c0_14] : memref<8x128xf32, #tpu.memory_space<vmem>>, vector<8x128xf32>
    tpu.vector_store %arg3[%c0_13, %c0_14], %24 {strides = array<i32>} : memref<8x128xf32, #tpu.memory_space<vmem>>, vector<8x128xf32>,
    return
  }
  func.func @transform_0(%arg0: i32) -> (i32, i32) {
    %c0_i32 = arith.constant 0 : i32
    %c0_i32_0 = arith.constant 0 : i32
    return %arg0, %c0_i32 : i32, i32
  }
  func.func @transform_1(%arg0: i32) -> (i32, i32) {
    %c0_i32 = arith.constant 0 : i32
    %c0_i32_0 = arith.constant 0 : i32
    %c0_i32_1 = arith.constant 0 : i32
    return %c0_i32, %c0_i32_0 : i32, i32
  }
  func.func @transform_2(%arg0: i32) -> (i32, i32) {
    %c0_i32 = arith.constant 0 : i32
    %c0_i32_0 = arith.constant 0 : i32
    return %arg0, %c0_i32 : i32, i32
  }
}

</mosaic_0001>

<bundles_post_ra>
// kernel: tpu_custom_call.1
= control target key start
LH: loop header
LB: loop body
LE: loop exit
PB: predicated region body
PF: predicated region fallthrough
CT: control target
= control target key end

     0   :  { %7 = vsyncpa [#allocation3], 0  ;;  %s508_s0 = inlined_call_operand.hbm [shape: f32[8,48], index: 0, kind: input, shape index: {}]   ;;  %s509_s1 = inlined_call_operand.hbm [shape: f32[192,128], index: 1, kind: input, shape index: {}]   ;;  %s510_s2 = inlined_call_operand.hbm [shape: f32[8,128], index: 2, kind: output, shape index: {}]  }
   0x1   :  { %8 = vsyncpa [#allocation6], 0 }
   0x2   :  { %9 = vsyncpa [#allocation4], 0  ;;  %s442_s9 = smov [#allocation2]   ;;  %s443_s11 = smov [#allocation5]  }
   0x3   :  { %s16_s10 = sshll.u32 %s442_s9, 4  ;;  %s25_s12 = sshll.u32 %s443_s11, 4  ;;  %s17_s10 = int_to_ptr.vmem [resolvable:$true] %s16_s10  ;;  %s465_s12 = int_to_ptr.vmem [resolvable:$true] %s25_s12 }
   0x4   :  { %s370_s15 = scalar_lea.hbm %s508_s0, 128 }
   0x5   :  { %p371_p0 = scmp.ne.s32.totalorder %s508_s0, %s370_s15  ;;  %p374_p1 = scmp.lt.u32.totalorder %s370_s15, %s508_s0 }
   0x7   :  { %p376_p2 = pnand %p374_p1, %p371_p0 }
   0x9   :  { %379 = shalt.err (!%p376_p2)
}
   0xa   :  { %s380_s20 = scalar_lea.vmem %s17_s10, 128  ;;  %p385_p4 = scmp.lt.s32.totalorder %s17_s10, %s17_s10 }
   0xb   :  { %p381_p3 = scmp.ne.s32.totalorder %s17_s10, %s380_s20  ;;  %p386_p5 = scmp.lt.s32.totalorder %s380_s20, %s380_s20 }
   0xd   :  { %p387_p6 = por %p386_p5, %p385_p4 }
   0xf   :  { %p388_p7 = pnand %p387_p6, %p381_p3 }
  0x11   :  { %391 = shalt.err (!%p388_p7)
}
  0x12   :  { %19 = dma.hbm_to_vmem [thread:$0]  %s508_s0, 128, %s17_s10, [#allocation3]  }
  0x13   :  { %s392_s25 = scalar_lea.hbm %s509_s1, 3072 }
  0x14   :  { %p393_p8 = scmp.ne.s32.totalorder %s509_s1, %s392_s25  ;;  %p396_p9 = scmp.lt.u32.totalorder %s392_s25, %s509_s1 }
  0x16   :  { %p398_p10 = pnand %p396_p9, %p393_p8 }
  0x18   :  { %401 = shalt.err (!%p398_p10)
}
  0x19   :  { %s402_s30 = scalar_lea.vmem %s465_s12, 3072  ;;  %p407_p12 = scmp.lt.s32.totalorder %s465_s12, %s465_s12 }
  0x1a   :  { %p403_p11 = scmp.ne.s32.totalorder %s465_s12, %s402_s30  ;;  %p408_p13 = scmp.lt.s32.totalorder %s402_s30, %s402_s30 }
  0x1c   :  { %p409_p0 = por %p408_p13, %p407_p12 }
  0x1e   :  { %p410_p1 = pnand %p409_p0, %p403_p11 }
  0x20   :  { %413 = shalt.err (!%p410_p1)
}
  0x21   :  { %s444_s0 = smov 128   ;;  %s445_s3 = smov 8  }
  0x22   :  { %31 = dma.hbm_to_vmem [thread:$0]  %s509_s1, 3072, %s465_s12, [#allocation6], %s444_s0, %s444_s0, %s445_s3  }
  0x23   :  { %436 = dma.done.wait [#allocation3], 128  }
  0x24   :  { %437 = vsyncadd [#allocation3], 4294967168 }
  0x25   :  { %438 = dma.done.wait [#allocation6], 3072  }
  0x26   :  { %439 = vsyncadd [#allocation6], 4294964224  ;;  %v446_v0 = vmov 0.0|0.0   ;;  %vm447_vm0 = vmmov 0   ;;  %v448_v1 = vmov 0.0   ;;  %v38_v2 = vld [vmem:[#allocation5] sm:$0xff] }
  0x27   :  { %321 = vmatprep.subr.bf16.mxu0 %v446_v0  ;;  %283 = vmatprep.mubr.msk.f32.mxu0 %vm447_vm0, %v448_v1  ;;  %v39_v3 = vld [vmem:[#allocation5 + $0x8] sm:$0xff]  ;;  %v40_v4 = vld [vmem:[#allocation5 + $0x10] sm:$0xff]  ;;  %v41_v6 = vld [vmem:[#allocation5 + $0x18] sm:$0xff]  ;;  %vm67_vm1 = vcmask 392192   ;;  %s449_s1 = smov [#allocation7]  }
  0x28   :  { %330 = vmatprep.subr.bf16.mxu1 %v446_v0  ;;  %318 = vmatprep.mubr.msk.f32.mxu1 %vm447_vm0, %v448_v1  ;;  %v322_v5 = vpack.c.bf16 %v39_v3, %v38_v2  ;;  %v325_v7 = vpack.c.bf16 %v41_v6, %v40_v4  ;;  %v42_v8 = vld [vmem:[#allocation5 + $0x20] sm:$0xff]  ;;  %v43_v9 = vld [vmem:[#allocation5 + $0x28] sm:$0xff]  ;;  %v62_v11 = vld [vmem:[#allocation2] sm:$0xff]  ;;  %s234_s6 = sshll.u32 %s449_s1, 4  ;;  %s235_s6 = int_to_ptr.vmem [resolvable:$true] %s234_s6 }
  0x29   :  { %v328_v10 = vpack.c.bf16 %v43_v9, %v42_v8  ;;  %v45_v12 = vld [vmem:[#allocation5 + $0x38] sm:$0xff]  ;;  %v46_v13 = vld [vmem:[#allocation5 + $0x40] sm:$0xff]  ;;  %v47_v15 = vld [vmem:[#allocation5 + $0x48] sm:$0xff]  ;;  %s414_s7 = scalar_lea.vmem %s235_s6, 128  ;;  %p419_p3 = scmp.lt.s32.totalorder %s235_s6, %s235_s6 }
  0x2a   :  { %323 = vmatpush3.bf16.msra.mxu0 %v322_v5  ;;  %v331_v14 = vpack.c.bf16 %v46_v13, %v45_v12  ;;  %v48_v16 = vld [vmem:[#allocation5 + $0x50] sm:$0xff]  ;;  %v49_v18 = vld [vmem:[#allocation5 + $0x58] sm:$0xff]  ;;  %v50_v19 = vld [vmem:[#allocation5 + $0x60] sm:$0xff]  ;;  %p415_p2 = scmp.ne.s32.totalorder %s235_s6, %s414_s7  ;;  %p420_p4 = scmp.lt.s32.totalorder %s414_s7, %s414_s7 }
  0x2b   :  { %324 = vmatprep.subr.bf16.mxu0 %v446_v0  ;;  %v334_v17 = vpack.c.bf16 %v48_v16, %v47_v15  ;;  %v337_v20 = vpack.c.bf16 %v50_v19, %v49_v18  ;;  %v51_v21 = vld [vmem:[#allocation5 + $0x68] sm:$0xff]  ;;  %v52_v22 = vld [vmem:[#allocation5 + $0x70] sm:$0xff]  ;;  %v53_v24 = vld [vmem:[#allocation5 + $0x78] sm:$0xff] }
  0x2c   :  { %332 = vmatpush3.bf16.msra.mxu1 %v331_v14  ;;  %v340_v23 = vpack.c.bf16 %v52_v22, %v51_v21  ;;  %v54_v25 = vld [vmem:[#allocation5 + $0x80] sm:$0xff]  ;;  %v55_v27 = vld [vmem:[#allocation5 + $0x88] sm:$0xff]  ;;  %v56_v28 = vld [vmem:[#allocation5 + $0x90] sm:$0xff]  ;;  %p421_p5 = por %p420_p4, %p419_p3 }
  0x2d   :  { %333 = vmatprep.subr.bf16.mxu1 %v446_v0  ;;  %v343_v26 = vpack.c.bf16 %v54_v25, %v53_v24  ;;  %v346_v29 = vpack.c.bf16 %v56_v28, %v55_v27  ;;  %v57_v30 = vld [vmem:[#allocation5 + $0x98] sm:$0xff]  ;;  %v58_v31 = vld [vmem:[#allocation5 + $0xa0] sm:$0xff]  ;;  %v59_v33 = vld [vmem:[#allocation5 + $0xa8] sm:$0xff] }
  0x2e   :  { %326 = vmatpush3.bf16.msra.mxu0 %v325_v7  ;;  %v349_v32 = vpack.c.bf16 %v58_v31, %v57_v30  ;;  %v60_v34 = vld [vmem:[#allocation5 + $0xb0] sm:$0xff]  ;;  %v246_v45 = vld [vmem:[#allocation5 + $0xb8] ss:$0 sm:$0xff]  ;;  %p422_p6 = pnand %p421_p5, %p415_p2 }
  0x2f   :  { %327 = vmatprep.subr.bf16.mxu0 %v446_v0  ;;  %v352_v35 = vpack.c.bf16 %v60_v34, %v59_v33  ;;  %v244_v36 = vld [vmem:[#allocation5 + $0x30] ss:$0 sm:$0xff] }
  0x30   :  { %335 = vmatpush3.bf16.msra.mxu1 %v334_v17 }
  0x31   :  { %336 = vmatprep.subr.bf16.mxu1 %v446_v0 }
  0x32   :  { %329 = vmatpush3.bf16.msra.mxu0 %v328_v10 }
  0x34   :  { %338 = vmatpush3.bf16.msra.mxu1 %v337_v20 }
  0x35   :  { %284 = vmatmul.mubr.msk.f32.vlgmr.msra.gmra.mrb[0].mxu0 %vm67_vm1, %v62_v11  ;;  %339 = vmatprep.subr.bf16.mxu1 %v446_v0 }
  0x38   :  { %341 = vmatpush3.bf16.msra.mxu1 %v340_v23 }
  0x39   :  { %342 = vmatprep.subr.bf16.mxu1 %v446_v0 }
  0x3c   :  { %344 = vmatpush3.bf16.msra.mxu1 %v343_v26 }
  0x3d   :  { %345 = vmatprep.subr.bf16.mxu1 %v446_v0 }
  0x40   :  { %347 = vmatpush3.bf16.msra.mxu1 %v346_v29 }
  0x41   :  { %348 = vmatprep.subr.bf16.mxu1 %v446_v0 }
  0x44   :  { %350 = vmatpush3.bf16.msra.mxu1 %v349_v32 }
  0x45   :  { %351 = vmatprep.subr.bf16.mxu1 %v446_v0 }
  0x48   :  { %353 = vmatpush3.bf16.msra.mxu1 %v352_v35 }
 0x108   :  { %v137_v37 = vpop.f32.mrb[0].mxu0 }
 0x109   :  { %v138_v38 = vadd.f32 %v244_v36, %v137_v37  ;;  %v285_v39 = vpop.f32.mrb[1].mxu0 }
 0x10b   :  { %v141_v40 = vsub.f32 0.0, %v138_v38 }
 0x10d   :  { %v142_v41 = vmul.f32 1.442695, %v141_v40 }
 0x10f   :  { %362 = vpow2.f32 %v142_v41 }
 0x119   :  { %v363_v42 = vpop.eup %362 }
 0x11a   :  { %v144_v43 = vadd.f32 1.0, %v363_v42 }
 0x11c   :  { %364 = vrcp.f32 %v144_v43 }
 0x126   :  { %v365_v44 = vpop.eup %364 }
 0x127   :  { %319 = vmatmul.mubr.f32.vlgmr.msra.gmra.mrb[0].mxu1 %v365_v44 }
 0x1fa   :  { %v217_v46 = vpop.f32.mrb[0].mxu1 }
 0x1fb   :  { %v218_v47 = vadd.f32 %v246_v45, %v217_v46  ;;  %v320_v48 = vpop.f32.mrb[1].mxu1 }
 0x1fd   :  { %v221_v49 = vsub.f32 0.0, %v218_v47 }
 0x1ff   :  { %v222_v50 = vmul.f32 1.442695, %v221_v49 }
 0x201   :  { %366 = vpow2.f32 %v222_v50 }
 0x20b   :  { %v367_v51 = vpop.eup %366 }
 0x20c   :  { %v224_v52 = vadd.f32 1.0, %v367_v51 }
 0x20e   :  { %368 = vrcp.f32 %v224_v52 }
 0x218   :  { %v369_v53 = vpop.eup %368 }
 0x219   :  { %227 = vst [vmem:[#allocation7] sm:$0xff] %v369_v53 }
 0x21a   :  { %425 = shalt.err (!%p422_p6)
}
 0x21b   :  { %s426_s10 = scalar_lea.hbm %s510_s2, 128 }
 0x21c   :  { %p427_p7 = scmp.ne.s32.totalorder %s510_s2, %s426_s10  ;;  %p430_p8 = scmp.lt.u32.totalorder %s426_s10, %s510_s2 }
 0x21e   :  { %p432_p9 = pnand %p430_p8, %p427_p7 }
 0x220   :  { %435 = shalt.err (!%p432_p9)
}
 0x221   :  { %237 = dma.vmem_to_hbm [thread:$0]  %s235_s6, 128, %s510_s2, [#allocation4]  }
 0x222   :  { %440 = dma.done.wait [#allocation4], 128  }
 0x223   :  { %441 = vsyncadd [#allocation4], 4294967168 }
 0x224   :  { %241 = vsyncpa [#allocation3], 1 }
 0x225   :  { %242 = vsyncpa [#allocation6], 1 }
 0x226   :  { %243 = vsyncpa [#allocation4], 1 }

</bundles_post_ra>
